<compile_context>
chip_gen: v7x
topology: tpu7x:2x2x1
jax: 0.10.0
libtpu: 0.0.40
codegen_flags: <defaults>
</compile_context>

<pallas_src>
import functools

import numpy as np
import jax
import jax.numpy as jnp
from jax.experimental import pallas as pl
from jax.experimental.pallas import tpu as pltpu


# ---------------------------------------------------------------------------
# Kernel
# ---------------------------------------------------------------------------
def _avgpool_shortcut_kernel(x_ref, p_ref, o_ref, *, n_blk, in_c, out_c):
    # x_ref : (n_blk, in_c,  H*W)        lane-dense input slab
    # p_ref : (H*W, H_out*W_out)         pooling matrix, 1/k^2 taps folded in
    # o_ref : (n_blk, out_c, H_out*W_out) lane-dense output slab (incl. zero channels)
    p = p_ref[...]
    hwo = o_ref.shape[-1]
    pad_c = out_c - in_c
    if pad_c > 0:
        zeros_pad = jnp.zeros((pad_c, hwo), o_ref.dtype)   # hoisted splat
    for b in range(n_blk):                                  # small static unroll (<= 8)
        xb = x_ref[b].astype(jnp.float32)                   # (in_c, H*W)
        pooled = jnp.dot(xb, p, preferred_element_type=jnp.float32)  # (in_c, Ho*Wo)
        o_ref[b, :in_c, :] = pooled.astype(o_ref.dtype)
        if pad_c > 0:
            o_ref[b, in_c:, :] = zeros_pad


# ---------------------------------------------------------------------------
# Helpers
# ---------------------------------------------------------------------------
def _pool_matrix_full(h, w, h_out, w_out, kernel, stride):
    """P (H*W, H_out*W_out): flattened-spatial pooling, out = x_flat @ P."""
    p = np.zeros((h * w, h_out * w_out), dtype=np.float32)
    scale = 1.0 / float(kernel * kernel)
    for ho in range(h_out):
        for wo in range(w_out):
            col = ho * w_out + wo
            for i in range(kernel):
                for j in range(kernel):
                    row = (ho * stride + i) * w + (wo * stride + j)
                    p[row, col] = scale
    return jnp.asarray(p)


def _round_up(v, m):
    return -(-v // m) * m


def _padded_bytes(rows, lanes, itemsize):
    """VMEM footprint of a (rows, lanes) tile with (8,128)-style padding."""
    sublane = 8 * max(1, 4 // itemsize)      # f32: 8, bf16: 16, int8: 32
    return _round_up(rows, sublane) * _round_up(max(lanes, 1), 128) * itemsize


def _pick_batch_block(n, in_c, out_c, hw, hwo, itemsize,
                      budget_bytes=32 * 1024 * 1024, max_blk=8):
    """Largest divisor of N (capped) whose double-buffered blocks fit the VMEM budget,
    keeping >= 2 grid steps when possible so v7x's two TensorCores both get work."""
    per_img = (_padded_bytes(in_c, hw, itemsize)
               + _padded_bytes(out_c, hwo, itemsize))
    p_bytes = _padded_bytes(hw, hwo, 4)
    cap = max(1, min(max_blk, n // 2 if n >= 2 else 1))
    best = 1
    for cand in range(1, cap + 1):
        if n % cand == 0 and 2 * (cand * per_img + p_bytes) <= budget_bytes:
            best = cand
    return best


# ---------------------------------------------------------------------------
# Wrapper
# ---------------------------------------------------------------------------
def avg_pool_shortcut(x, *, stride, out_c, in_c):
    N, C, H, W = x.shape
    assert C == in_c, "channel mismatch"
    assert out_c >= in_c, "AvgPoolShortCut requires out_c >= in_c"

    # Same static branch as the PyTorch module (shapes are static at trace time).
    kernel = 1 if (H % 2 != 0) else stride
    H_out = (H - kernel) // stride + 1
    W_out = (W - kernel) // stride + 1
    HW, HWo = H * W, H_out * W_out

    p = _pool_matrix_full(H, W, H_out, W_out, kernel, stride)
    x_flat = x.reshape(N, in_c, HW)                    # free reshape (contiguous NCHW)

    itemsize = int(np.dtype(x.dtype).itemsize)
    n_blk = _pick_batch_block(N, in_c, out_c, HW, HWo, itemsize)
    grid = (N // n_blk,)

    kern = functools.partial(_avgpool_shortcut_kernel,
                             n_blk=n_blk, in_c=in_c, out_c=out_c)

    cost = pl.CostEstimate(
        flops=2 * N * in_c * HW * HWo,
        transcendentals=0,
        bytes_accessed=N * in_c * HW * itemsize
        + N * out_c * HWo * itemsize
        + HW * HWo * 4,
    )

    out_flat = pl.pallas_call(
        kern,
        out_shape=jax.ShapeDtypeStruct((N, out_c, HWo), x.dtype),
        grid_spec=pltpu.PrefetchScalarGridSpec(
            num_scalar_prefetch=0,
            grid=grid,
            in_specs=[
                pl.BlockSpec((n_blk, in_c, HW), lambda nb: (nb, 0, 0)),
                pl.BlockSpec((HW, HWo), lambda nb: (0, 0)),   # resident, not re-fetched
            ],
            out_specs=pl.BlockSpec((n_blk, out_c, HWo), lambda nb: (nb, 0, 0)),
        ),
        compiler_params=pltpu.CompilerParams(
            dimension_semantics=("parallel",),
            vmem_limit_bytes=48 * 1024 * 1024),   # safe on v7x (64 MiB), >> v5e default
        cost_estimate=cost,
    )(x_flat, p)

    return out_flat.reshape(N, out_c, H_out, W_out)


# ---------------------------------------------------------------------------
# Pure-JAX reference (F.avg_pool2d + channel zero-pad concat)
# ---------------------------------------------------------------------------
def _reference_forward(x, stride, out_c, in_c):
    N, C, H, W = x.shape
    kernel = 1 if (H % 2 != 0) else stride
    H_out = (H - kernel) // stride + 1
    W_out = (W - kernel) // stride + 1
    windows = jnp.stack(
        [x[:, :, i:i + stride * H_out:stride, j:j + stride * W_out:stride]
         for i in range(kernel) for j in range(kernel)],
        axis=0)
    pooled = windows.mean(axis=0)
    pad = jnp.zeros((N, out_c - in_c, H_out, W_out), x.dtype)
    return jnp.concatenate([pooled, pad], axis=1)


if __name__ == "__main__":
    key = jax.random.PRNGKey(0)

    # Branch 1: even spatial size -> avg_pool2d(x, stride, stride)
    x1 = jax.random.normal(key, (2, 4, 16, 16), dtype=jnp.float32)
    y1 = jax.block_until_ready(avg_pool_shortcut(x1, stride=2, out_c=8, in_c=4))
    r1 = _reference_forward(x1, stride=2, out_c=8, in_c=4)
    assert y1.shape == (2, 8, 8, 8)
    np.testing.assert_allclose(np.asarray(y1), np.asarray(r1), rtol=1e-5, atol=1e-5)

    # Branch 2: odd spatial size -> avg_pool2d(x, 1, stride)  (strided subsample)
    x2 = jax.random.normal(jax.random.PRNGKey(1), (2, 4, 15, 15), dtype=jnp.float32)
    y2 = jax.block_until_ready(avg_pool_shortcut(x2, stride=2, out_c=8, in_c=4))
    r2 = _reference_forward(x2, stride=2, out_c=8, in_c=4)
    assert y2.shape == (2, 8, 8, 8)
    np.testing.assert_allclose(np.asarray(y2), np.asarray(r2), rtol=1e-5, atol=1e-5)

    print("KERNEL_OK")
</pallas_src>

<mosaic_0001>
module attributes {stable_mosaic.version = 11 : i64} {
  func.func @_avgpool_shortcut_kernel(%arg0: i32, %arg1: memref<1x4x256xf32, #tpu.memory_space<vmem>>, %arg2: memref<256x64xf32, #tpu.memory_space<vmem>>, %arg3: memref<1x8x64xf32, #tpu.memory_space<vmem>>) attributes {dimension_semantics = [#tpu.dimension_semantics<parallel>], iteration_bounds = array<i64: 2>, scalar_prefetch = 0 : i64, scratch_operands = 0 : i64, tpu.core_type = #tpu.core_type<tc>, window_params = [{transform_indices = @transform_0, window_bounds = array<i64: 1, 4, 256>}, {pipeline_mode = #tpu.pipeline_mode<synchronous>, transform_indices = @transform_1, window_bounds = array<i64: 256, 64>}, {transform_indices = @transform_2, window_bounds = array<i64: 1, 8, 64>}]} {
    %c0 = arith.constant 0 : index
    %c0_0 = arith.constant 0 : index
    %0 = vector.load %arg2[%c0, %c0_0] : memref<256x64xf32, #tpu.memory_space<vmem>>, vector<256x64xf32>
    %cst = arith.constant 0.000000e+00 : f32
    %1 = vector.broadcast %cst : f32 to vector<4x64xf32>
    %c0_1 = arith.constant 0 : index
    %c0_2 = arith.constant 0 : index
    %c0_3 = arith.constant 0 : index
    %2 = vector.load %arg1[%c0_1, %c0_2, %c0_3] : memref<1x4x256xf32, #tpu.memory_space<vmem>>, vector<1x4x256xf32>
    %3 = vector.shape_cast %2 : vector<1x4x256xf32> to vector<4x256xf32>
    %cst_4 = arith.constant dense<0.000000e+00> : vector<4x64xf32>
    %4 = tpu.matmul %3, %0, %cst_4 {dimension_numbers = #tpu.dot_dimension_numbers<[1], [0], [0], [1], [0, 0, 1, 1], [], []>} : vector<4x256xf32>, vector<256x64xf32>, vector<4x64xf32> -> vector<4x64xf32>
    %c0_5 = arith.constant 0 : index
    %c0_6 = arith.constant 0 : index
    %c0_7 = arith.constant 0 : index
    %5 = vector.load %arg3[%c0_5, %c0_6, %c0_7] : memref<1x8x64xf32, #tpu.memory_space<vmem>>, vector<1x4x64xf32>
    %6 = vector.shape_cast %5 : vector<1x4x64xf32> to vector<4x64xf32>
    %7 = vector.shape_cast %4 : vector<4x64xf32> to vector<1x4x64xf32>
    tpu.vector_store %arg3[%c0_5, %c0_6, %c0_7], %7 {strides = array<i32>} : memref<1x8x64xf32, #tpu.memory_space<vmem>>, vector<1x4x64xf32>,
    %c0_8 = arith.constant 0 : index
    %c4 = arith.constant 4 : index
    %c0_9 = arith.constant 0 : index
    %8 = vector.load %arg3[%c0_8, %c4, %c0_9] : memref<1x8x64xf32, #tpu.memory_space<vmem>>, vector<1x4x64xf32>
    %9 = vector.shape_cast %8 : vector<1x4x64xf32> to vector<4x64xf32>
    %10 = vector.shape_cast %1 : vector<4x64xf32> to vector<1x4x64xf32>
    tpu.vector_store %arg3[%c0_8, %c4, %c0_9], %10 {strides = array<i32>} : memref<1x8x64xf32, #tpu.memory_space<vmem>>, vector<1x4x64xf32>,
    return
  }
  func.func @transform_0(%arg0: i32) -> (i32, i32, i32) {
    %c0_i32 = arith.constant 0 : i32
    %c0_i32_0 = arith.constant 0 : i32
    %c0_i32_1 = arith.constant 0 : i32
    return %arg0, %c0_i32, %c0_i32_0 : i32, i32, i32
  }
  func.func @transform_1(%arg0: i32) -> (i32, i32) {
    %c0_i32 = arith.constant 0 : i32
    %c0_i32_0 = arith.constant 0 : i32
    %c0_i32_1 = arith.constant 0 : i32
    return %c0_i32, %c0_i32_0 : i32, i32
  }
  func.func @transform_2(%arg0: i32) -> (i32, i32, i32) {
    %c0_i32 = arith.constant 0 : i32
    %c0_i32_0 = arith.constant 0 : i32
    %c0_i32_1 = arith.constant 0 : i32
    return %arg0, %c0_i32, %c0_i32_0 : i32, i32, i32
  }
}

</mosaic_0001>

<bundles_post_ra>
// kernel: tpu_custom_call.1
= control target key start
LH: loop header
LB: loop body
LE: loop exit
PB: predicated region body
PF: predicated region fallthrough
CT: control target
= control target key end

     0   :  { %7 = vsyncpa [#allocation3], 0  ;;  %s721_s0 = inlined_call_operand.vmem [shape: f32[2,4,256], index: 0, kind: input, shape index: {}]   ;;  %s722_s1 = inlined_call_operand.vmem [shape: f32[256,64], index: 1, kind: input, shape index: {}]   ;;  %s723_s2 = inlined_call_operand.hbm [shape: f32[2,8,64], index: 2, kind: output, shape index: {}]  }
   0x1   :  { %9 = vsyncpa [#allocation3 + $0x1], 0  ;;  %s525_s9 = smov 0   ;;  %s527_s10 = smov 0  }
   0x2   :  { %s529_s11 = smov 0   ;;  %s531_s12 = smov 0  }
   0x3 LB: > { %s546_s13 = sadd.s32 4294967295, %s506_s12   ;;  %s324_s14 = sadd.s32 4294967294, %s506_s12   ;;  %s506_s12 = sphi %s531_s12, %s729_s12   ;;  %s502_s11 = sphi %s529_s11, %s728_s11   ;;  %s498_s10 = sphi %s527_s10, %s727_s10   ;;  %s494_s9 = sphi %s525_s9, %s726_s9  }
   0x4   : > { %s550_s15 = sadd.s32 1, %s506_s12   ;;  %s69_s16 = sadd.s32 1, %s502_s11 }
   0x5   : > { %s66_s17 = ssub.s32 %s506_s12, %s550_s15  ;;  %p79_p0 = scmp.ne.s32.totalorder %s502_s11, %s498_s10 }
   0x6   : > { %p67_p1 = scmp.eq.s32.totalorder %s66_s17, 0  ;;  %p80_p2 = scmp.eq.s32.totalorder %s546_s13, 1 }
   0x7   : > { %p85_p3 = scmp.ne.s32.totalorder %s498_s10, %s494_s9  ;;  %p86_p4 = scmp.eq.s32.totalorder %s324_s14, 1 }
   0x8   : > { %s561_s18 = scalar_select %p67_p1, %s502_s11, %s69_s16  }
   0x9   : > { %p563_p5 = por %p80_p2, %p79_p0  ;;  %p567_p6 = por %p86_p4, %p85_p3 }
   0xa   : > { %p327_p7 = scmp.ge.s32.totalorder %s506_s12, 1  ;;  %p115_p8 = scmp.lt.s32.totalorder %s506_s12, 3 }
   0xc   : > { %p116_p9 = pnand %p327_p7, %p115_p8 }
   0xd   : > { %v158_v0 = vld [vmem:[%s722_s1 + $0x80] sm:$0xff] (!%p116_p9)  ;;  %v159_v1 = vld [vmem:[%s722_s1 + $0x88] sm:$0xff] (!%p116_p9)  ;;  %p137_p10 = scmp.lt.s32.totalorder (!%p116_p9), %s546_s13, 1  ;;  %v160_v5 = vld [vmem:[%s722_s1 + $0x90] sm:$0xff] (!%p116_p9)  ;;  %s134_s5 = sand.u32 (!%p116_p9), 1, %s498_s10   ;;  %vm248_vm0 = vcmask (!%p116_p9), 519168  }
   0xe   : > { %119 = sbr.rel (%p116_p9) target bundleno = 277 (0x115), region = 28  ;;  %v142_v2 = vld [vmem:[%s722_s1] sm:$0xff] (!%p116_p9)  ;;  %v371_v3 = vpack.c.bf16 (!%p116_p9), %v159_v1, %v158_v0  ;;  %v143_v4 = vld [vmem:[%s722_s1 + $0x8] sm:$0xff] (!%p116_p9)  ;;  %v161_v6 = vld [vmem:[%s722_s1 + $0x98] sm:$0xff] (!%p116_p9)  ;;  %v508_v50 = vmov (!%p116_p9), 0.0   ;;  %s332_s8 = sshll.u32 (!%p116_p9), %s546_s13, 7 }
   0xf   : > { %v373_v7 = vpack.c.bf16 (!%p116_p9), %v143_v4, %v142_v2  ;;  %v375_v8 = vpack.c.bf16 (!%p116_p9), %v161_v6, %v160_v5  ;;  %v144_v9 = vld [vmem:[%s722_s1 + $0x10] sm:$0xff] (!%p116_p9)  ;;  %v145_v10 = vld [vmem:[%s722_s1 + $0x18] sm:$0xff] (!%p116_p9)  ;;  %v162_v11 = vld [vmem:[%s722_s1 + $0xa0] sm:$0xff] (!%p116_p9)  ;;  %s679_s21 = scalar_lea.hbm (!%p116_p9), %s723_s2, %s332_s8  ;;  %s252_s22 = scalar_lea.sflag (!%p116_p9), [#allocation3], %s134_s5 }
  0x10   : > { %372 = vmatprep.subr.bf16.mxu0 (!%p116_p9), %v371_v3  ;;  %v163_v12 = vld [vmem:[%s722_s1 + $0xa8] sm:$0xff] (!%p116_p9)  ;;  %v377_v13 = vpack.c.bf16 (!%p116_p9), %v145_v10, %v144_v9  ;;  %v146_v15 = vld [vmem:[%s722_s1 + $0x20] sm:$0xff] (!%p116_p9)  ;;  %v164_v17 = vld [vmem:[%s722_s1 + $0xb0] sm:$0xff] (!%p116_p9) }
  0x11   : > { %374 = vmatpush3.bf16.msra.mxu0 (!%p116_p9), %v373_v7  ;;  %v379_v14 = vpack.c.bf16 (!%p116_p9), %v163_v12, %v162_v11  ;;  %v147_v16 = vld [vmem:[%s722_s1 + $0x28] sm:$0xff] (!%p116_p9)  ;;  %v165_v18 = vld [vmem:[%s722_s1 + $0xb8] sm:$0xff] (!%p116_p9)  ;;  %v148_v21 = vld [vmem:[%s722_s1 + $0x30] sm:$0xff] (!%p116_p9) }
  0x12   : > { %376 = vmatprep.subr.bf16.mxu0 (!%p116_p9), %v375_v8  ;;  %v381_v19 = vpack.c.bf16 (!%p116_p9), %v147_v16, %v146_v15  ;;  %v383_v20 = vpack.c.bf16 (!%p116_p9), %v165_v18, %v164_v17  ;;  %v149_v22 = vld [vmem:[%s722_s1 + $0x38] sm:$0xff] (!%p116_p9)  ;;  %v166_v23 = vld [vmem:[%s722_s1 + $0xc0] sm:$0xff] (!%p116_p9)  ;;  %v167_v24 = vld [vmem:[%s722_s1 + $0xc8] sm:$0xff] (!%p116_p9) }
  0x13   : > { %v385_v27 = vpack.c.bf16 (!%p116_p9), %v149_v22, %v148_v21  ;;  %v387_v28 = vpack.c.bf16 (!%p116_p9), %v167_v24, %v166_v23  ;;  %v150_v29 = vld [vmem:[%s722_s1 + $0x40] sm:$0xff] (!%p116_p9)  ;;  %v151_v30 = vld [vmem:[%s722_s1 + $0x48] sm:$0xff] (!%p116_p9)  ;;  %v168_v31 = vld [vmem:[%s722_s1 + $0xd0] sm:$0xff] (!%p116_p9) }
  0x14   : > { %v169_v32 = vld [vmem:[%s722_s1 + $0xd8] sm:$0xff] (!%p116_p9)  ;;  %v389_v33 = vpack.c.bf16 (!%p116_p9), %v151_v30, %v150_v29  ;;  %v152_v35 = vld [vmem:[%s722_s1 + $0x50] sm:$0xff] (!%p116_p9)  ;;  %v170_v37 = vld [vmem:[%s722_s1 + $0xe0] sm:$0xff] (!%p116_p9) }
  0x15   : > { %s138_s17 = scalar_select %p137_p10, %s546_s13, 1  ;;  %378 = vmatpush3.bf16.msra.mxu0 %v377_v13  ;;  %v391_v34 = vpack.c.bf16 %v169_v32, %v168_v31  ;;  %v153_v36 = vld [vmem:[%s722_s1 + $0x58] sm:$0xff]  ;;  %v171_v38 = vld [vmem:[%s722_s1 + $0xe8] sm:$0xff]  ;;  %v154_v41 = vld [vmem:[%s722_s1 + $0x60] sm:$0xff] }
  0x16   : > { %380 = vmatprep.subr.bf16.mxu0 %v379_v14  ;;  %v393_v39 = vpack.c.bf16 %v153_v36, %v152_v35  ;;  %v395_v40 = vpack.c.bf16 %v171_v38, %v170_v37  ;;  %v155_v42 = vld [vmem:[%s722_s1 + $0x68] sm:$0xff]  ;;  %v172_v43 = vld [vmem:[%s722_s1 + $0xf0] sm:$0xff]  ;;  %v173_v44 = vld [vmem:[%s722_s1 + $0xf8] sm:$0xff]  ;;  %s509_s13 = smov [#allocation2]  }
  0x17   : > { %s335_s23 = sshll.u32 %s138_s17, 3  ;;  %v397_v45 = vpack.c.bf16 %v155_v42, %v154_v41  ;;  %v399_v46 = vpack.c.bf16 %v173_v44, %v172_v43  ;;  %v156_v47 = vld [vmem:[%s722_s1 + $0x70] sm:$0xff]  ;;  %v157_v48 = vld [vmem:[%s722_s1 + $0x78] sm:$0xff] }
  0x18   : > { %s141_s6 = scalar_lea.vmem %s721_s0, %s335_s23  ;;  %v401_v49 = vpack.c.bf16 %v157_v48, %v156_v47  ;;  %s448_s23 = sshll.u32 %s509_s13, 4  ;;  %s449_s23 = int_to_ptr.vmem [resolvable:$false] %s448_s23 }
  0x19   : > { %v174_v25 = vld [vmem:[%s141_s6] sm:$0xff]  ;;  %382 = vmatpush3.bf16.msra.mxu0 %v381_v19  ;;  %s328_s6 = sshll.u32 %s134_s5, 3  ;;  %s450_s25 = scalar_lea.vmem %s449_s23, 256 }
  0x1a   : > { %v176_v26 = vcombine.high %v174_v25, %v174_v25  ;;  %384 = vmatprep.subr.bf16.mxu0 %v383_v20  ;;  %s136_s7 = scalar_lea.vmem [#allocation2], %s328_s6 }
  0x1b   : > { %250 = vst.msk [vmem:[%s136_s7 + $0x4] sm:$0xf] %vm248_vm0, %v508_v50  ;;  %s265_s14 = sshll.u32 %s136_s7, 4  ;;  %s681_s14 = int_to_ptr.vmem [resolvable:$true] %s265_s14 }
  0x1c   : > { %242 = vmatprep.mubr.f32.mxu0 %v176_v26  ;;  %s444_s24 = scalar_lea.vmem %s681_s14, 128  ;;  %p451_p0 = scmp.lt.s32.totalorder %s681_s14, %s449_s23 }
  0x1d   : > { %386 = vmatpush3.bf16.msra.mxu0 %v385_v27  ;;  %p445_p11 = scmp.ne.s32.totalorder %s681_s14, %s444_s24  ;;  %p452_p1 = scmp.lt.s32.totalorder %s450_s25, %s444_s24 }
  0x1e   : > { %388 = vmatprep.subr.bf16.mxu0 %v387_v28 }
  0x1f   : > { %p446_p12 = pnand %p445_p11, %p563_p5  ;;  %p453_p2 = por %p452_p1, %p451_p0 }
  0x21   : > { %390 = vmatpush3.bf16.msra.mxu0 %v389_v33  ;;  %p447_p13 = pneg %p446_p12 }
  0x22   : > { %392 = vmatprep.subr.bf16.mxu0 %v391_v34 }
  0x23   : > { %p454_p3 = pnand %p453_p2, %p447_p13 }
  0x25   : > { %394 = vmatpush3.bf16.msra.mxu0 %v393_v39 }
  0x26   : > { %396 = vmatprep.subr.bf16.mxu0 %v395_v40 }
  0x29   : > { %398 = vmatpush3.bf16.msra.mxu0 %v397_v45 }
  0x2a   : > { %400 = vmatprep.subr.bf16.mxu0 %v399_v46 }
  0x2d   : > { %402 = vmatpush3.bf16.msra.mxu0 %v401_v49 }
  0x30   : > { %243 = vmatmul.mubr.f32.vlgmr.msra.gmra.mrb[0].mxu0 %v174_v25 }
 0x103   : > { %v368_v51 = vpop.f32.mrb[0].mxu0 }
 0x104   : > { %v369_v52 = vpop.f32.mrb[1].mxu0 }
 0x105   : > { %v370_v53 = vadd.f32 %v369_v52, %v368_v51 }
 0x107   : > { %249 = vst.msk [vmem:[%s136_s7] sm:$0xf] %vm248_vm0, %v370_v53 }
 0x108   : > { %457 = shalt.err (!%p454_p3)
}
 0x109   : > { %s458_s26 = scalar_lea.hbm %s679_s21, 128  ;;  %s462_s29 = scalar_lea.hbm %s723_s2, 256 }
 0x10a   : > { %p459_p4 = scmp.ne.s32.totalorder %s679_s21, %s458_s26  ;;  %p463_p9 = scmp.lt.u32.totalorder %s679_s21, %s723_s2 }
 0x10b   : > { %p464_p10 = scmp.lt.u32.totalorder %s462_s29, %s458_s26  ;;  %p466_p12 = scmp.lt.u32.totalorder %s458_s26, %s679_s21 }
 0x10c   : > { %p460_p7 = pnand %p459_p4, %p563_p5 }
 0x10d   : > { %p465_p11 = por %p464_p10, %p463_p9 }
 0x10e   : > { %p461_p8 = pneg %p460_p7 }
 0x10f   : > { %p467_p13 = por %p466_p12, %p465_p11 }
 0x111   : > { %p468_p0 = pnand %p467_p13, %p461_p8 }
 0x113   : > { %471 = shalt.err (!%p468_p0)
}
 0x114   : > { %403 = dma.vmem_to_hbm [thread:$0]  (%p563_p5), %s681_s14, 128, %s679_s21, %s252_s22  }
 0x115 PF: > { %p409_p1 = scmp.ge.s32.totalorder %s506_s12, 2  ;;  %s277_s4 = sand.u32 1, %s494_s9  }
 0x116   : > { %s278_s5 = scalar_lea.sflag [#allocation3], %s277_s4 }
 0x117   : > { %p406_p2 = pnand %p409_p1, %p567_p6 }
 0x119   : > { %489 = dma.done.wait (!%p406_p2), %s278_s5, 128  }
 0x11a   : > { %491 = vsyncadd (!%p406_p2), %s278_s5, 4294967168  ;;  %p12_p3 = scmp.ge.s32.totalorder %s550_s15, 4   ;;  %s726_s9 = smov %s498_s10 }
 0x11b   : > { %s727_s10 = smov %s502_s11  ;;  %s728_s11 = smov %s561_s18 }
 0x11c   : > { %s729_s12 = smov %s550_s15  ;;  %14 = sbr.rel (!%p12_p3) target bundleno = 3 (0x3), region = 63 }
 0x123   :  { %283 = vsyncpa [#allocation3], 1 }
 0x124   :  { %285 = vsyncpa [#allocation3 + $0x1], 1 }

</bundles_post_ra>
